<compile_context>
chip_gen: v6e
topology: v6e:2x2x1
jax: 0.10.0
libtpu: 0.0.40
codegen_flags: <defaults>
</compile_context>

<pallas_src>
import functools
import math

import jax
import jax.numpy as jnp
import numpy as np
from jax.experimental import pallas as pl
from jax.experimental.pallas import tpu as pltpu

LRELU_SLOPE = 0.2
BN_EPS = 1e-5


# ---------------------------------------------------------------------------
# Fused whole-network kernel (built per (nlayers, bn) configuration)
# ---------------------------------------------------------------------------
def _make_fused_mlp_kernel(nlayers, bn):
    """Ref order: x, [w_i (, gamma_i, beta_i)] * nlayers, w_out, b_out, out.

    All feature axes are flattened + block-diagonal-packed, so every layer is one
    lane-dense 2-D matmul and the activation stays on-chip for the whole forward.
    """

    def kernel(*refs):
        x_ref, out_ref = refs[0], refs[-1]
        idx = 1
        h = x_ref[...].astype(jnp.float32)                 # (bs, C_in), lives in VMEM/vregs
        for _ in range(nlayers):
            w = refs[idx][...]                             # (C_in, C) bf16 block-diagonal
            idx += 1
            y = jnp.dot(h.astype(jnp.bfloat16), w,
                        preferred_element_type=jnp.float32)
            if bn:
                g = refs[idx][...]                         # (1, C) f32
                b = refs[idx + 1][...]                     # (1, C) f32
                idx += 2
                inv_bs = 1.0 / y.shape[0]
                mean = jnp.sum(y, axis=0, keepdims=True) * inv_bs
                ex2 = jnp.sum(y * y, axis=0, keepdims=True) * inv_bs
                var = jnp.maximum(ex2 - mean * mean, 0.0)  # biased var (training-mode BN)
                inv = jax.lax.rsqrt(var + BN_EPS) * g
                y = y * inv + (b - mean * inv)             # one FMA per element
            h = jnp.where(y >= 0, y, LRELU_SLOPE * y)      # LeakyReLU(0.2)
        w_out = refs[idx][...]                             # (C_last, C_out) bf16
        b_out = refs[idx + 1][...]                         # (1, C_out) f32
        y = jnp.dot(h.astype(jnp.bfloat16), w_out,
                    preferred_element_type=jnp.float32)
        out_ref[...] = y + b_out

    return kernel


# ---------------------------------------------------------------------------
# VMEM budget: lane/sublane-padding-aware estimate, capped at physical VMEM
# ---------------------------------------------------------------------------
def _padded_bytes(shape, dtype):
    itemsize = np.dtype(dtype).itemsize
    if len(shape) == 0:
        return 4
    rows = int(np.prod(shape[:-1])) if len(shape) > 1 else 1
    cols = int(shape[-1])
    sub = max(1, 32 // (8 * itemsize)) * 8          # 8 rows (f32) / 16 rows (bf16) per vreg
    rows_p = -(-rows // sub) * sub
    cols_p = -(-cols // 128) * 128
    return rows_p * cols_p * itemsize


def _vmem_limit_bytes(inputs, out_shape, out_dtype=jnp.float32):
    try:
        cap = pltpu.get_tpu_info().vmem_capacity_bytes      # 64 MiB on v7x, 128 MiB v5e/v6e
    except Exception:
        cap = 64 << 20                                      # conservative (v7x) fallback
    need = sum(_padded_bytes(a.shape, a.dtype) for a in inputs)
    need += _padded_bytes(out_shape, out_dtype)
    # 4x headroom for live f32 activations/accumulators inside the fused body.
    return int(min(cap, max(32 << 20, 4 * need)))


# ---------------------------------------------------------------------------
# One-time parameter packing (done at init, NOT per forward call)
# ---------------------------------------------------------------------------
def _block_diag(w):
    """torch layout (L, out_f, in_f) -> block-diagonal (L*in_f, L*out_f)."""
    L, out_f, in_f = w.shape
    wt = jnp.swapaxes(w, 1, 2)                               # (L, in_f, out_f)
    eye = jnp.eye(L, dtype=w.dtype)
    return jnp.einsum("lio,lm->limo", wt, eye).reshape(L * in_f, L * out_f)


def pack_params(params, nlayers, bn=True):
    """Repack torch-layout params into kernel layout (block-diag bf16 weights)."""
    packed = []
    for i in range(nlayers):
        packed.append(_block_diag(params[f"w{i}"]).astype(jnp.bfloat16))
        if bn:
            packed.append(params[f"gamma{i}"].reshape(1, -1).astype(jnp.float32))
            packed.append(params[f"beta{i}"].reshape(1, -1).astype(jnp.float32))
    packed.append(_block_diag(params["w_out"]).astype(jnp.bfloat16))
    packed.append(params["b_out"].reshape(1, -1).astype(jnp.float32))
    return packed


# ---------------------------------------------------------------------------
# Parameter init (deterministic, mirrors ParallelLinear.reset_parameters)
# ---------------------------------------------------------------------------
def init_parallel_linear(key, num_linears, out_f, in_f, bias=True):
    kw, kb = jax.random.split(key)
    bound = 1.0 / math.sqrt(in_f)   # kaiming_uniform(a=sqrt(5)) bound == 1/sqrt(fan_in)
    w = jax.random.uniform(kw, (num_linears, out_f, in_f), jnp.float32, -bound, bound)
    b = (jax.random.uniform(kb, (num_linears, out_f), jnp.float32, -bound, bound)
         if bias else None)
    return w, b


def init_parallel_mlp(key, ni, no, nhidden, nlayers, nMLPs, bn=True):
    params = {}
    keys = jax.random.split(key, nlayers + 1)
    for i in range(nlayers):
        fin = ni if i == 0 else nhidden
        w, _ = init_parallel_linear(keys[i], nMLPs, nhidden, fin, bias=False)
        params[f"w{i}"] = w
        if bn:
            C = nhidden * nMLPs
            params[f"gamma{i}"] = jnp.ones((C,), jnp.float32)   # fresh BatchNorm1d
            params[f"beta{i}"] = jnp.zeros((C,), jnp.float32)
    fin_out = ni if nlayers == 0 else nhidden
    w_out, b_out = init_parallel_linear(keys[-1], nMLPs, no, fin_out, bias=True)
    params["w_out"] = w_out
    params["b_out"] = b_out
    return params


# ---------------------------------------------------------------------------
# Forward pass (single fused Pallas kernel) + pure-JAX f32 reference
# ---------------------------------------------------------------------------
def parallel_mlp_forward(x, packed_params, *, nlayers, nMLPs, no, bn=True):
    """x: (bs, nMLPs, ni) f32 -> (bs, nMLPs, no) f32."""
    bs = x.shape[0]
    c_out = nMLPs * no
    x_flat = x.reshape(bs, -1)                               # flatten only; no transpose
    kernel = _make_fused_mlp_kernel(nlayers, bn)
    vmem_limit = _vmem_limit_bytes([x_flat, *packed_params], (bs, c_out))
    out = pl.pallas_call(
        kernel,
        out_shape=jax.ShapeDtypeStruct((bs, c_out), jnp.float32),
        compiler_params=pltpu.CompilerParams(vmem_limit_bytes=vmem_limit),
    )(x_flat, *packed_params)
    return out.reshape(bs, nMLPs, no)


def reference_forward(x, params, nlayers, bn=True):
    bs = x.shape[0]
    h = x
    for i in range(nlayers):
        h = jnp.einsum("bli,lji->blj", h, params[f"w{i}"])
        if bn:
            h2 = h.reshape(bs, -1)
            mean = jnp.mean(h2, axis=0, keepdims=True)
            var = jnp.mean((h2 - mean) ** 2, axis=0, keepdims=True)
            h2 = ((h2 - mean) / jnp.sqrt(var + BN_EPS) * params[f"gamma{i}"]
                  + params[f"beta{i}"])
            h = h2.reshape(h.shape)
        h = jnp.where(h >= 0, h, LRELU_SLOPE * h)
    return jnp.einsum("bli,lji->blj", h, params["w_out"]) + params["b_out"]


# ---------------------------------------------------------------------------
if __name__ == "__main__":
    # Small shapes consistent with the module: x is (batch, nMLPs, ni).
    bs, nMLPs, ni = 8, 4, 16
    nhidden, no, nlayers = 32, 8, 2

    key = jax.random.PRNGKey(0)
    kx, kp = jax.random.split(key)
    x = jax.random.normal(kx, (bs, nMLPs, ni), jnp.float32)

    # --- bn=True path (linear -> training-mode BatchNorm -> LeakyReLU) ---
    params = init_parallel_mlp(kp, ni, no, nhidden, nlayers, nMLPs, bn=True)
    packed = pack_params(params, nlayers, bn=True)           # one-time repack at init
    fwd = jax.jit(functools.partial(parallel_mlp_forward,
                                    nlayers=nlayers, nMLPs=nMLPs, no=no, bn=True))
    out = jax.block_until_ready(fwd(x, packed))
    ref = reference_forward(x, params, nlayers, bn=True)
    # bf16 matmul inputs (f32 accumulation / f32 BN): relaxed tolerance vs f32 ref.
    np.testing.assert_allclose(np.asarray(out), np.asarray(ref), rtol=2e-2, atol=2e-2)
    assert out.shape == (bs, nMLPs, no)

    # --- bn=False path (linear -> LeakyReLU) ---
    params_nobn = init_parallel_mlp(kp, ni, no, nhidden, nlayers, nMLPs, bn=False)
    packed_nobn = pack_params(params_nobn, nlayers, bn=False)
    fwd_nobn = jax.jit(functools.partial(parallel_mlp_forward,
                                         nlayers=nlayers, nMLPs=nMLPs, no=no, bn=False))
    out2 = jax.block_until_ready(fwd_nobn(x, packed_nobn))
    ref2 = reference_forward(x, params_nobn, nlayers, bn=False)
    np.testing.assert_allclose(np.asarray(out2), np.asarray(ref2), rtol=2e-2, atol=2e-2)

    print("KERNEL_OK")
</pallas_src>

<mosaic_0001>
module attributes {stable_mosaic.version = 11 : i64} {
  func.func @kernel(%arg0: memref<8x64xf32, #tpu.memory_space<vmem>>, %arg1: memref<64x128xbf16, #tpu.memory_space<vmem>>, %arg2: memref<1x128xf32, #tpu.memory_space<vmem>>, %arg3: memref<1x128xf32, #tpu.memory_space<vmem>>, %arg4: memref<128x128xbf16, #tpu.memory_space<vmem>>, %arg5: memref<1x128xf32, #tpu.memory_space<vmem>>, %arg6: memref<1x128xf32, #tpu.memory_space<vmem>>, %arg7: memref<128x32xbf16, #tpu.memory_space<vmem>>, %arg8: memref<1x32xf32, #tpu.memory_space<vmem>>, %arg9: memref<8x32xf32, #tpu.memory_space<vmem>>) attributes {dimension_semantics = [], scalar_prefetch = 0 : i64, scratch_operands = 0 : i64, tpu.core_type = #tpu.core_type<tc>} {
    %c0 = arith.constant 0 : index
    %c0_0 = arith.constant 0 : index
    %0 = vector.load %arg0[%c0, %c0_0] : memref<8x64xf32, #tpu.memory_space<vmem>>, vector<8x64xf32>
    %c0_1 = arith.constant 0 : index
    %c0_2 = arith.constant 0 : index
    %1 = vector.load %arg1[%c0_1, %c0_2] : memref<64x128xbf16, #tpu.memory_space<vmem>>, vector<64x128xbf16>
    %2 = arith.truncf %0 : vector<8x64xf32> to vector<8x64xbf16>
    %cst = arith.constant dense<0.000000e+00> : vector<8x128xf32>
    %3 = tpu.matmul %2, %1, %cst {dimension_numbers = #tpu.dot_dimension_numbers<[1], [0], [0], [1], [0, 0, 1, 1], [], []>} : vector<8x64xbf16>, vector<64x128xbf16>, vector<8x128xf32> -> vector<8x128xf32>
    %c0_3 = arith.constant 0 : index
    %c0_4 = arith.constant 0 : index
    %4 = vector.load %arg2[%c0_3, %c0_4] : memref<1x128xf32, #tpu.memory_space<vmem>>, vector<1x128xf32>
    %c0_5 = arith.constant 0 : index
    %c0_6 = arith.constant 0 : index
    %5 = vector.load %arg3[%c0_5, %c0_6] : memref<1x128xf32, #tpu.memory_space<vmem>>, vector<1x128xf32>
    %cst_7 = arith.constant dense<0.000000e+00> : vector<128xf32>
    %6 = vector.multi_reduction <add>, %3, %cst_7 [0] : vector<8x128xf32> to vector<128xf32>
    %7 = vector.shape_cast %6 : vector<128xf32> to vector<1x128xf32>
    %cst_8 = arith.constant 1.250000e-01 : f32
    %8 = vector.broadcast %cst_8 : f32 to vector<1x128xf32>
    %9 = arith.mulf %7, %8 : vector<1x128xf32>
    %10 = arith.mulf %3, %3 : vector<8x128xf32>
    %cst_9 = arith.constant dense<0.000000e+00> : vector<128xf32>
    %11 = vector.multi_reduction <add>, %10, %cst_9 [0] : vector<8x128xf32> to vector<128xf32>
    %12 = vector.shape_cast %11 : vector<128xf32> to vector<1x128xf32>
    %cst_10 = arith.constant 1.250000e-01 : f32
    %13 = vector.broadcast %cst_10 : f32 to vector<1x128xf32>
    %14 = arith.mulf %12, %13 : vector<1x128xf32>
    %15 = arith.mulf %9, %9 : vector<1x128xf32>
    %16 = arith.subf %14, %15 : vector<1x128xf32>
    %cst_11 = arith.constant 0.000000e+00 : f32
    %17 = vector.broadcast %cst_11 : f32 to vector<1x128xf32>
    %18 = arith.maximumf %16, %17 : vector<1x128xf32>
    %cst_12 = arith.constant 9.99999974E-6 : f32
    %19 = vector.broadcast %cst_12 : f32 to vector<1x128xf32>
    %20 = arith.addf %18, %19 : vector<1x128xf32>
    %21 = math.rsqrt %20 : vector<1x128xf32>
    %22 = arith.mulf %21, %4 : vector<1x128xf32>
    %23 = vector.broadcast %22 : vector<1x128xf32> to vector<8x128xf32>
    %24 = arith.mulf %3, %23 : vector<8x128xf32>
    %25 = arith.mulf %9, %22 : vector<1x128xf32>
    %26 = arith.subf %5, %25 : vector<1x128xf32>
    %27 = vector.broadcast %26 : vector<1x128xf32> to vector<8x128xf32>
    %28 = arith.addf %24, %27 : vector<8x128xf32>
    %cst_13 = arith.constant 0.000000e+00 : f32
    %29 = vector.broadcast %cst_13 : f32 to vector<8x128xf32>
    %30 = arith.cmpf oge, %28, %29 : vector<8x128xf32>
    %cst_14 = arith.constant 2.000000e-01 : f32
    %31 = vector.broadcast %cst_14 : f32 to vector<8x128xf32>
    %32 = arith.mulf %31, %28 : vector<8x128xf32>
    %33 = arith.select %30, %28, %32 : vector<8x128xi1>, vector<8x128xf32>
    %c0_15 = arith.constant 0 : index
    %c0_16 = arith.constant 0 : index
    %34 = vector.load %arg4[%c0_15, %c0_16] : memref<128x128xbf16, #tpu.memory_space<vmem>>, vector<128x128xbf16>
    %35 = arith.truncf %33 : vector<8x128xf32> to vector<8x128xbf16>
    %cst_17 = arith.constant dense<0.000000e+00> : vector<8x128xf32>
    %36 = tpu.matmul %35, %34, %cst_17 {dimension_numbers = #tpu.dot_dimension_numbers<[1], [0], [0], [1], [0, 0, 1, 1], [], []>} : vector<8x128xbf16>, vector<128x128xbf16>, vector<8x128xf32> -> vector<8x128xf32>
    %c0_18 = arith.constant 0 : index
    %c0_19 = arith.constant 0 : index
    %37 = vector.load %arg5[%c0_18, %c0_19] : memref<1x128xf32, #tpu.memory_space<vmem>>, vector<1x128xf32>
    %c0_20 = arith.constant 0 : index
    %c0_21 = arith.constant 0 : index
    %38 = vector.load %arg6[%c0_20, %c0_21] : memref<1x128xf32, #tpu.memory_space<vmem>>, vector<1x128xf32>
    %cst_22 = arith.constant dense<0.000000e+00> : vector<128xf32>
    %39 = vector.multi_reduction <add>, %36, %cst_22 [0] : vector<8x128xf32> to vector<128xf32>
    %40 = vector.shape_cast %39 : vector<128xf32> to vector<1x128xf32>
    %cst_23 = arith.constant 1.250000e-01 : f32
    %41 = vector.broadcast %cst_23 : f32 to vector<1x128xf32>
    %42 = arith.mulf %40, %41 : vector<1x128xf32>
    %43 = arith.mulf %36, %36 : vector<8x128xf32>
    %cst_24 = arith.constant dense<0.000000e+00> : vector<128xf32>
    %44 = vector.multi_reduction <add>, %43, %cst_24 [0] : vector<8x128xf32> to vector<128xf32>
    %45 = vector.shape_cast %44 : vector<128xf32> to vector<1x128xf32>
    %cst_25 = arith.constant 1.250000e-01 : f32
    %46 = vector.broadcast %cst_25 : f32 to vector<1x128xf32>
    %47 = arith.mulf %45, %46 : vector<1x128xf32>
    %48 = arith.mulf %42, %42 : vector<1x128xf32>
    %49 = arith.subf %47, %48 : vector<1x128xf32>
    %cst_26 = arith.constant 0.000000e+00 : f32
    %50 = vector.broadcast %cst_26 : f32 to vector<1x128xf32>
    %51 = arith.maximumf %49, %50 : vector<1x128xf32>
    %cst_27 = arith.constant 9.99999974E-6 : f32
    %52 = vector.broadcast %cst_27 : f32 to vector<1x128xf32>
    %53 = arith.addf %51, %52 : vector<1x128xf32>
    %54 = math.rsqrt %53 : vector<1x128xf32>
    %55 = arith.mulf %54, %37 : vector<1x128xf32>
    %56 = vector.broadcast %55 : vector<1x128xf32> to vector<8x128xf32>
    %57 = arith.mulf %36, %56 : vector<8x128xf32>
    %58 = arith.mulf %42, %55 : vector<1x128xf32>
    %59 = arith.subf %38, %58 : vector<1x128xf32>
    %60 = vector.broadcast %59 : vector<1x128xf32> to vector<8x128xf32>
    %61 = arith.addf %57, %60 : vector<8x128xf32>
    %cst_28 = arith.constant 0.000000e+00 : f32
    %62 = vector.broadcast %cst_28 : f32 to vector<8x128xf32>
    %63 = arith.cmpf oge, %61, %62 : vector<8x128xf32>
    %cst_29 = arith.constant 2.000000e-01 : f32
    %64 = vector.broadcast %cst_29 : f32 to vector<8x128xf32>
    %65 = arith.mulf %64, %61 : vector<8x128xf32>
    %66 = arith.select %63, %61, %65 : vector<8x128xi1>, vector<8x128xf32>
    %c0_30 = arith.constant 0 : index
    %c0_31 = arith.constant 0 : index
    %67 = vector.load %arg7[%c0_30, %c0_31] : memref<128x32xbf16, #tpu.memory_space<vmem>>, vector<128x32xbf16>
    %c0_32 = arith.constant 0 : index
    %c0_33 = arith.constant 0 : index
    %68 = vector.load %arg8[%c0_32, %c0_33] : memref<1x32xf32, #tpu.memory_space<vmem>>, vector<1x32xf32>
    %69 = arith.truncf %66 : vector<8x128xf32> to vector<8x128xbf16>
    %cst_34 = arith.constant dense<0.000000e+00> : vector<8x32xf32>
    %70 = tpu.matmul %69, %67, %cst_34 {dimension_numbers = #tpu.dot_dimension_numbers<[1], [0], [0], [1], [0, 0, 1, 1], [], []>} : vector<8x128xbf16>, vector<128x32xbf16>, vector<8x32xf32> -> vector<8x32xf32>
    %71 = vector.broadcast %68 : vector<1x32xf32> to vector<8x32xf32>
    %72 = arith.addf %70, %71 : vector<8x32xf32>
    %c0_35 = arith.constant 0 : index
    %c0_36 = arith.constant 0 : index
    %73 = vector.load %arg9[%c0_35, %c0_36] : memref<8x32xf32, #tpu.memory_space<vmem>>, vector<8x32xf32>
    tpu.vector_store %arg9[%c0_35, %c0_36], %72 {strides = array<i32>} : memref<8x32xf32, #tpu.memory_space<vmem>>, vector<8x32xf32>,
    return
  }
}

</mosaic_0001>

<bundles_post_ra>
// kernel: parallel_mlp_forward.1
= control target key start
LH: loop header
LB: loop body
LE: loop exit
PB: predicated region body
PF: predicated region fallthrough
CT: control target
= control target key end

     0   :  { %v537_v0 = vmov 0.0   ;;  %vm538_vm0 = vmmov 0   ;;  %vm67_vm1 = vcmask 523264   ;;  %v134_v38 = vlaneseq  ;;  %s702_s1 = inlined_call_operand.vmem [shape: bf16[64,128], index: 1, kind: input, shape index: {}]   ;;  %s703_s0 = inlined_call_operand.vmem [shape: f32[8,64], index: 0, kind: input, shape index: {}]   ;;  %s704_s4 = inlined_call_operand.vmem [shape: bf16[128,128], index: 4, kind: input, shape index: {}]   ;;  %s705_s2 = inlined_call_operand.vmem [shape: f32[1,128], index: 2, kind: input, shape index: {}]   ;;  %s706_s3 = inlined_call_operand.vmem [shape: f32[1,128], index: 3, kind: input, shape index: {}]   ;;  %s707_s7 = inlined_call_operand.vmem [shape: bf16[128,32], index: 7, kind: input, shape index: {}]   ;;  %s708_s5 = inlined_call_operand.vmem [shape: f32[1,128], index: 5, kind: input, shape index: {}]   ;;  %s709_s6 = inlined_call_operand.vmem [shape: f32[1,128], index: 6, kind: input, shape index: {}]   ;;  %s710_s8 = inlined_call_operand.vmem [shape: f32[1,32], index: 8, kind: input, shape index: {}]   ;;  %s711_s9 = inlined_call_operand.vmem [shape: f32[8,32], index: 9, kind: output, shape index: {}]  }
   0x1   :  { %459 = vmatprep.subr.bf16.mxu0 %v537_v0  ;;  %v513_v1 = vld [vmem:[%s702_s1 + $0x18] sm:$0xff]   ;;  %467 = vmatprep.mubr.msk.bf16.mxu0 %vm538_vm0, %v537_v0  ;;  %v514_v2 = vld [vmem:[%s702_s1 + $0x10] sm:$0xff]   ;;  %v515_v3 = vld [vmem:[%s702_s1 + $0x8] sm:$0xff]   ;;  %vm408_vm4 = vcmask 261120  }
   0x2   :  { %471 = vmatprep.subr.bf16.mxu1 %v537_v0  ;;  %487 = vmatprep.mubr.msk.bf16.mxu1 %vm538_vm0, %v537_v0  ;;  %v516_v4 = vld [vmem:[%s702_s1] sm:$0xff]   ;;  %v517_v7 = vld [vmem:[%s704_s4 + $0x38] sm:$0xff]   ;;  %v518_v8 = vld [vmem:[%s704_s4 + $0x30] sm:$0xff]   ;;  %v135_v39 = vshrl.u32 %v134_v38, 7 }
   0x3   :  { %460 = vmatpush3.bf16.msra.mxu0 %v513_v1  ;;  %v33_v5 = vld [vmem:[%s703_s0] sm:$0xff]  ;;  %472 = vmatpush3.bf16.msra.mxu1 %v517_v7  ;;  %v519_v9 = vld [vmem:[%s704_s4 + $0x28] sm:$0xff]   ;;  %v521_v11 = vld [vmem:[%s704_s4 + $0x18] sm:$0xff]  }
   0x4   :  { %461 = vmatprep.subr.bf16.mxu0 %v537_v0  ;;  %v42_v6 = vpack.c.bf16 %v33_v5, %v33_v5  ;;  %473 = vmatprep.subr.bf16.mxu1 %v537_v0  ;;  %v520_v10 = vld [vmem:[%s704_s4 + $0x20] sm:$0xff]   ;;  %v522_v12 = vld [vmem:[%s704_s4 + $0x10] sm:$0xff]   ;;  %v523_v13 = vld [vmem:[%s704_s4 + $0x8] sm:$0xff]   ;;  %v650_v41 = vsub.s32 0, %v135_v39 }
   0x5   :  { %v524_v14 = vld [vmem:[%s704_s4] sm:$0xff]   ;;  %v525_v54 = vld [vmem:[%s707_s7 + $0x38] sm:$0xff]   ;;  %v526_v55 = vld [vmem:[%s707_s7 + $0x30] sm:$0xff]  }
   0x6   :  { %v111_v40 = vld [vmem:[%s705_s2] sm:$0x1]  ;;  %v527_v56 = vld [vmem:[%s707_s7 + $0x28] sm:$0xff]   ;;  %v529_v58 = vld [vmem:[%s707_s7 + $0x18] sm:$0xff]  }
   0x7   :  { %462 = vmatpush3.bf16.msra.mxu0 %v514_v2  ;;  %474 = vmatpush3.bf16.msra.mxu1 %v518_v8  ;;  %v112_v44 = vld [vmem:[%s706_s3] sm:$0x1]  ;;  %v530_v59 = vld [vmem:[%s707_s7 + $0x10] sm:$0xff]   ;;  %v531_v60 = vld [vmem:[%s707_s7 + $0x8] sm:$0xff]  }
   0x8   :  { %463 = vmatprep.subr.bf16.mxu0 %v537_v0  ;;  %475 = vmatprep.subr.bf16.mxu1 %v537_v0  ;;  %v528_v57 = vld [vmem:[%s707_s7 + $0x20] sm:$0xff]  }
   0x9   :  { %v532_v61 = vld [vmem:[%s707_s7] sm:$0xff]  }
   0xb   :  { %464 = vmatpush3.bf16.msra.mxu0 %v515_v3  ;;  %476 = vmatpush3.bf16.msra.mxu1 %v519_v9 }
   0xc   :  { %465 = vmatprep.subr.bf16.mxu0 %v537_v0  ;;  %477 = vmatprep.subr.bf16.mxu1 %v537_v0 }
   0xf   :  { %466 = vmatpush3.bf16.msra.mxu0 %v516_v4  ;;  %478 = vmatpush3.bf16.msra.mxu1 %v520_v10 }
  0x10   :  { %491 = vmatprep.subr.bf16.mxu0 %v537_v0  ;;  %479 = vmatprep.subr.bf16.mxu1 %v537_v0 }
  0x12   :  { %468 = vmatmul.mubr.msk.bf16.vlgmr.msra.gmra.mxu0 %vm67_vm1, %v42_v6 }
  0x13   :  { %507 = vmatprep.mubr.msk.bf16.mxu0 %vm538_vm0, %v537_v0  ;;  %480 = vmatpush3.bf16.msra.mxu1 %v521_v11 }
  0x14   :  { %481 = vmatprep.subr.bf16.mxu1 %v537_v0  ;;  %492 = vmatpush3.bf16.msra.mxu0 %v525_v54 }
  0x15   :  { %493 = vmatprep.subr.bf16.mxu0 %v537_v0 }
  0x17   :  { %482 = vmatpush3.bf16.msra.mxu1 %v522_v12 }
  0x18   :  { %483 = vmatprep.subr.bf16.mxu1 %v537_v0  ;;  %494 = vmatpush3.bf16.msra.mxu0 %v526_v55 }
  0x19   :  { %495 = vmatprep.subr.bf16.mxu0 %v537_v0 }
  0x1b   :  { %484 = vmatpush3.bf16.msra.mxu1 %v523_v13 }
  0x1c   :  { %485 = vmatprep.subr.bf16.mxu1 %v537_v0  ;;  %496 = vmatpush3.bf16.msra.mxu0 %v527_v56 }
  0x1d   :  { %497 = vmatprep.subr.bf16.mxu0 %v537_v0 }
  0x1f   :  { %486 = vmatpush3.bf16.msra.mxu1 %v524_v14 }
  0x20   :  { %498 = vmatpush3.bf16.msra.mxu0 %v528_v57 }
  0x21   :  { %499 = vmatprep.subr.bf16.mxu0 %v537_v0 }
  0x24   :  { %500 = vmatpush3.bf16.msra.mxu0 %v529_v58 }
  0x25   :  { %501 = vmatprep.subr.bf16.mxu0 %v537_v0 }
  0x28   :  { %502 = vmatpush3.bf16.msra.mxu0 %v530_v59 }
  0x29   :  { %503 = vmatprep.subr.bf16.mxu0 %v537_v0 }
  0x2c   :  { %504 = vmatpush3.bf16.msra.mxu0 %v531_v60 }
  0x2d   :  { %505 = vmatprep.subr.bf16.mxu0 %v537_v0 }
  0x30   :  { %506 = vmatpush3.bf16.msra.mxu0 %v532_v61 }
  0xd2   :  { %v105_v15 = vpop.f32.mrf.mxu0 }
  0xd3   :  { %v113_v16 = vrot.slane %v105_v15, 4  ;;  %v120_v17 = vmul.f32 %v105_v15, %v105_v15 }
  0xd4   :  { %v469_v18 = vpop.f32.mrf.mxu0 }
  0xd5   :  { %v114_v19 = vadd.f32 %v113_v16, %v105_v15  ;;  %v121_v20 = vrot.slane %v120_v17, 4 }
  0xd6   :  { %v108_v21 = vpop.f32.mrf.mxu0 }
  0xd7   :  { %v115_v22 = vrot.slane %v114_v19, 2  ;;  %v122_v23 = vadd.f32 %v121_v20, %v120_v17  ;;  %v256_v21 = vld [vmem:[%s708_s5] sm:$0x1] }
  0xd8   :  { %v470_v24 = vpop.f32.mrf.mxu0 }
  0xd9   :  { %v116_v25 = vadd.f32 %v115_v22, %v114_v19  ;;  %v123_v26 = vrot.slane %v122_v23, 2  ;;  %v257_v24 = vld [vmem:[%s709_s6] sm:$0x1] }
  0xdb   :  { %v117_v27 = vrot.slane %v116_v25, 1  ;;  %v124_v28 = vadd.f32 %v123_v26, %v122_v23 }
  0xdd   :  { %v118_v29 = vadd.f32 %v117_v27, %v116_v25  ;;  %v125_v30 = vrot.slane %v124_v28, 1 }
  0xdf   :  { %v119_v31 = vmul.f32 0.125, %v118_v29  ;;  %v126_v32 = vadd.f32 %v125_v30, %v124_v28 }
  0xe1   :  { %v127_v33 = vmul.f32 0.125, %v126_v32  ;;  %v128_v34 = vmul.f32 %v119_v31, %v119_v31 }
  0xe3   :  { %v129_v35 = vsub.f32 %v127_v33, %v128_v34  ;;  %v427_v34 = vld [vmem:[%s710_s8] ss:$0 sm:$0xff] }
  0xe5   :  { %v130_v36 = vmax.f32 %v129_v35, 0.0 }
  0xe7   :  { %v131_v37 = vadd.f32 1e-05, %v130_v36 }
  0xe9   :  { %533 = vrsqrt.f32 %v131_v37 }
  0xf6   :  { %v534_v42 = vpop.eup %533 }
  0xf7   :  { %v133_v43 = vmul.f32 %v534_v42, %v111_v40 }
  0xf9   :  { %v137_v45 = vrot.slane %v133_v43, %v650_v41  ;;  %v139_v46 = vmul.f32 %v133_v43, %v119_v31 }
  0xfb   :  { %v140_v47 = vsub.f32 %v112_v44, %v139_v46  ;;  %v138_v48 = vmul.f32 %v137_v45, %v105_v15 }
  0xfd   :  { %v145_v49 = vrot.slane %v140_v47, %v650_v41 }
  0xff   :  { %v147_v50 = vadd.f32 %v145_v49, %v138_v48 }
 0x101   :  { %vm148_vm2 = vcmp.ge.f32.partialorder %v147_v50, 0.0  ;;  %v149_v51 = vmul.f32 0.2, %v147_v50 }
 0x103   :  { %v150_v52 = vsel %vm148_vm2, %v147_v50, %v149_v51 }
 0x104   :  { %v167_v53 = vpack.c.bf16 %v150_v52, %v150_v52 }
 0x106   :  { %488 = vmatmul.mubr.bf16.vlgmr.msra.gmra.mxu1 %v167_v53 }
 0x1c6   :  { %v250_v62 = vpop.f32.mrf.mxu1 }
 0x1c7   :  { %v258_v63 = vrot.slane %v250_v62, 4  ;;  %v265_v1 = vmul.f32 %v250_v62, %v250_v62 }
 0x1c8   :  { %v489_v2 = vpop.f32.mrf.mxu1 }
 0x1c9   :  { %v259_v3 = vadd.f32 %v258_v63, %v250_v62  ;;  %v266_v4 = vrot.slane %v265_v1, 4 }
 0x1ca   :  { %v253_v5 = vpop.f32.mrf.mxu1 }
 0x1cb   :  { %v260_v6 = vrot.slane %v259_v3, 2  ;;  %v267_v7 = vadd.f32 %v266_v4, %v265_v1 }
 0x1cc   :  { %v490_v8 = vpop.f32.mrf.mxu1 }
 0x1cd   :  { %v261_v9 = vadd.f32 %v260_v6, %v259_v3  ;;  %v268_v10 = vrot.slane %v267_v7, 2 }
 0x1cf   :  { %v262_v11 = vrot.slane %v261_v9, 1  ;;  %v269_v12 = vadd.f32 %v268_v10, %v267_v7 }
 0x1d1   :  { %v263_v13 = vadd.f32 %v262_v11, %v261_v9  ;;  %v270_v14 = vrot.slane %v269_v12, 1 }
 0x1d3   :  { %v264_v15 = vmul.f32 0.125, %v263_v13  ;;  %v271_v16 = vadd.f32 %v270_v14, %v269_v12 }
 0x1d5   :  { %v272_v0 = vmul.f32 0.125, %v271_v16  ;;  %v273_v17 = vmul.f32 %v264_v15, %v264_v15 }
 0x1d7   :  { %v274_v18 = vsub.f32 %v272_v0, %v273_v17 }
 0x1d9   :  { %v275_v19 = vmax.f32 %v274_v18, 0.0 }
 0x1db   :  { %v276_v20 = vadd.f32 1e-05, %v275_v19 }
 0x1dd   :  { %535 = vrsqrt.f32 %v276_v20 }
 0x1ea   :  { %v536_v22 = vpop.eup %535 }
 0x1eb   :  { %v278_v23 = vmul.f32 %v536_v22, %v256_v21 }
 0x1ed   :  { %v282_v25 = vrot.slane %v278_v23, %v650_v41  ;;  %v284_v26 = vmul.f32 %v278_v23, %v264_v15 }
 0x1ef   :  { %v285_v27 = vsub.f32 %v257_v24, %v284_v26  ;;  %v283_v28 = vmul.f32 %v282_v25, %v250_v62 }
 0x1f1   :  { %v290_v29 = vrot.slane %v285_v27, %v650_v41 }
 0x1f3   :  { %v292_v30 = vadd.f32 %v290_v29, %v283_v28 }
 0x1f5   :  { %vm293_vm3 = vcmp.ge.f32.partialorder %v292_v30, 0.0  ;;  %v294_v31 = vmul.f32 0.2, %v292_v30 }
 0x1f7   :  { %v295_v32 = vsel %vm293_vm3, %v292_v30, %v294_v31 }
 0x1f8   :  { %v313_v33 = vpack.c.bf16 %v295_v32, %v295_v32 }
 0x1fa   :  { %508 = vmatmul.mubr.bf16.vlgmr.msra.gmra.mxu0 %v313_v33 }
 0x2ba   :  { %v402_v35 = vpop.f32.mrf.mxu0 }
 0x2bb   :  { %v403_v36 = vadd.f32 %v427_v34, %v402_v35 }
 0x2bc   :  { %v509_v37 = vpop.f32.mrf.mxu0 }
 0x2bd   :  { %409 = vst.msk [vmem:[%s711_s9] sm:$0xff] %vm408_vm4, %v403_v36 }
 0x2be   :  { %v405_v38 = vpop.f32.mrf.mxu0 }
 0x2c0   :  { %v510_v39 = vpop.f32.mrf.mxu0 }

</bundles_post_ra>
